<compile_context>
chip_gen: v6e
topology: v6e:2x2x1
jax: 0.10.0
libtpu: 0.0.40
codegen_flags: <defaults>
</compile_context>

<pallas_src>
import functools

import jax
import jax.numpy as jnp
from jax.experimental import pallas as pl
from jax.experimental.pallas import tpu as pltpu


def se_block_kernel(x_ref, ones_ref, w1t_ref, b1_ref, w2t_ref, b2_ref, o_ref,
                    *, inv_hw):
    # x_ref block: (Nb, C, HW) -- HW on lanes, C on sublanes.
    nb, c, hw = x_ref.shape
    x = x_ref[...]                      # native dtype; never upcast the big block

    # Squeeze: global average pool over HW as a ones-vector matmul on the
    # otherwise-idle MXU -> f32 accumulation for free, no per-row cross-lane
    # reduce on the streaming path.  (Nb, C, HW) -> (Nb*C, HW) is a free
    # reinterpretation when C % 8 == 0.
    pool = jnp.dot(x.reshape(nb * c, hw), ones_ref[...],
                   preferred_element_type=jnp.float32)              # (Nb*C, 1)
    pool = pool.reshape(nb, c) * inv_hw                             # (Nb, C) f32

    # Excitation MLP on the pooled channel vectors (tiny; all f32).
    # Weights arrive pre-transposed from the wrapper: no in-kernel transpose.
    h = jnp.dot(pool, w1t_ref[...],
                preferred_element_type=jnp.float32) + b1_ref[...]   # (Nb, Cr)
    h = h * jax.nn.sigmoid(h)                                       # SiLU
    s = jnp.dot(h, w2t_ref[...],
                preferred_element_type=jnp.float32) + b2_ref[...]   # (Nb, C)
    gate = jax.nn.sigmoid(s)                                        # (Nb, C) f32

    # Scale: cast the TINY gate down to x's dtype and stream x straight out.
    o_ref[...] = (x * gate.astype(x.dtype)[:, :, None]).astype(o_ref.dtype)


def _vmem_limit_bytes():
    """Scoped-VMEM budget: ~3/4 of this generation's physical VMEM."""
    try:
        phys = int(pltpu.get_tpu_info().vmem_capacity_bytes)
    except Exception:
        phys = 64 << 20                 # conservative fallback: v7x per-TC VMEM
    limit = (phys * 3) // 4             # ~48 MiB on v7x, ~96 MiB on v5e/v6e
    return min(max(limit, 32 << 20), 100 << 20)


def _choose_batch_block(n, per_batch_bytes, target_bytes):
    """Pick Nb (a divisor of N) such that:
       * the x block is <= target_bytes (derived from the VMEM limit),
       * the grid has >= 2 steps whenever N >= 2,
       * the grid length is preferably a multiple of 2 (even work split
         across v7x's two TensorCores)."""
    if n <= 1:
        return 1
    cap = max(1, min(n // 2, target_bytes // max(per_batch_bytes, 1)))
    best = 1
    for nb in range(cap, 0, -1):
        if n % nb == 0:
            if best == 1:
                best = nb               # largest divisor <= cap, as fallback
            if (n // nb) % 2 == 0:
                return nb               # even number of grid steps
    return best


def se_block(x, w1, b1, w2, b2, *, donate_x=False):
    """x: (N, C, H, W); w1: (Cr, C); b1: (Cr,); w2: (C, Cr); b2: (C,)."""
    N, C, H, W = x.shape
    HW = H * W
    Cr = w1.shape[0]

    x2 = x.reshape(N, C, HW)

    vmem_limit = _vmem_limit_bytes()
    # ~limit/6 covers 2 input + 2 output buffers of the x block plus slack.
    nb = _choose_batch_block(N, C * HW * x.dtype.itemsize, vmem_limit // 6)
    grid = (N // nb,)

    # Hoist everything that is not per-element work out of the kernel:
    # ones-vector for the MXU pool, weight transposes, bias reshapes.
    ones_hw = jnp.ones((HW, 1), dtype=x.dtype)
    w1t = jnp.transpose(w1).astype(jnp.float32)   # (C, Cr)
    w2t = jnp.transpose(w2).astype(jnp.float32)   # (Cr, C)
    b1r = b1.reshape(1, Cr).astype(jnp.float32)
    b2r = b2.reshape(1, C).astype(jnp.float32)

    kernel = functools.partial(se_block_kernel, inv_hw=1.0 / HW)

    out = pl.pallas_call(
        kernel,
        out_shape=jax.ShapeDtypeStruct((N, C, HW), x.dtype),
        grid_spec=pltpu.PrefetchScalarGridSpec(
            num_scalar_prefetch=0,
            grid=grid,
            in_specs=[
                pl.BlockSpec((nb, C, HW), lambda n: (n, 0, 0)),   # x blocks
                pl.BlockSpec((HW, 1), lambda n: (0, 0)),          # ones (resident)
                pl.BlockSpec((C, Cr), lambda n: (0, 0)),          # w1.T (resident)
                pl.BlockSpec((1, Cr), lambda n: (0, 0)),          # b1
                pl.BlockSpec((Cr, C), lambda n: (0, 0)),          # w2.T
                pl.BlockSpec((1, C), lambda n: (0, 0)),           # b2
            ],
            out_specs=pl.BlockSpec((nb, C, HW), lambda n: (n, 0, 0)),
        ),
        # In-place gating is legal (elementwise on x); only alias when the
        # caller actually donates x and does not reuse it afterwards.
        input_output_aliases=({0: 0} if donate_x else {}),
        compiler_params=pltpu.CompilerParams(
            dimension_semantics=("parallel",),
            vmem_limit_bytes=vmem_limit),
    )(x2, ones_hw, w1t, b1r, w2t, b2r)

    return out.reshape(N, C, H, W)


def se_block_reference(x, w1, b1, w2, b2):
    """Pure-JAX reference mirroring the PyTorch module (f32 math)."""
    xf = x.astype(jnp.float32)
    pool = jnp.mean(xf, axis=(2, 3))                          # (N, C)
    h = pool @ w1.T + b1                                      # (N, Cr)
    h = h * jax.nn.sigmoid(h)                                 # SiLU
    s = jax.nn.sigmoid(h @ w2.T + b2)                         # (N, C)
    return xf * s[:, :, None, None]


if __name__ == "__main__":
    # Small shapes consistent with SEBlock(channels=16, reduction=8)
    N, C, H, W = 2, 16, 16, 16
    reduction = 8
    Cr = C // reduction

    key = jax.random.PRNGKey(0)
    kx, k1, k2, k3, k4 = jax.random.split(key, 5)

    x = jax.random.normal(kx, (N, C, H, W), dtype=jnp.float32)
    # Conv2d 1x1 weights squeezed to 2-D.
    w1 = jax.random.normal(k1, (Cr, C), dtype=jnp.float32) * 0.2   # down-proj weight
    b1 = jax.random.normal(k2, (Cr,), dtype=jnp.float32) * 0.1     # down-proj bias
    w2 = jax.random.normal(k3, (C, Cr), dtype=jnp.float32) * 0.2   # up-proj weight
    b2 = jax.random.normal(k4, (C,), dtype=jnp.float32) * 0.1      # up-proj bias

    # f32 path
    out = jax.block_until_ready(se_block(x, w1, b1, w2, b2))
    ref = se_block_reference(x, w1, b1, w2, b2)
    assert out.shape == x.shape and out.dtype == x.dtype
    assert jnp.allclose(out, ref, atol=1e-4, rtol=1e-4), "f32 mismatch vs reference"

    # bf16 I/O path (HBM-bound kernel -> halves bytes/element); gate math stays
    # f32 in-kernel, only the tiny gate is cast down for the final multiply.
    x_bf16 = x.astype(jnp.bfloat16)
    out_bf16 = jax.block_until_ready(se_block(x_bf16, w1, b1, w2, b2))
    ref_bf16 = se_block_reference(x_bf16, w1, b1, w2, b2)
    assert out_bf16.dtype == jnp.bfloat16
    assert jnp.allclose(out_bf16.astype(jnp.float32), ref_bf16,
                        atol=5e-2, rtol=5e-2), "bf16 mismatch vs reference"

    print("KERNEL_OK")
</pallas_src>

<mosaic_0001>
module attributes {stable_mosaic.version = 11 : i64} {
  func.func @se_block_kernel(%arg0: i32, %arg1: memref<1x16x256xf32, #tpu.memory_space<vmem>>, %arg2: memref<256x1xf32, #tpu.memory_space<vmem>>, %arg3: memref<16x2xf32, #tpu.memory_space<vmem>>, %arg4: memref<1x2xf32, #tpu.memory_space<vmem>>, %arg5: memref<2x16xf32, #tpu.memory_space<vmem>>, %arg6: memref<1x16xf32, #tpu.memory_space<vmem>>, %arg7: memref<1x16x256xf32, #tpu.memory_space<vmem>>) attributes {dimension_semantics = [#tpu.dimension_semantics<parallel>], iteration_bounds = array<i64: 2>, scalar_prefetch = 0 : i64, scratch_operands = 0 : i64, tpu.core_type = #tpu.core_type<tc>, window_params = [{transform_indices = @transform_0, window_bounds = array<i64: 1, 16, 256>}, {pipeline_mode = #tpu.pipeline_mode<synchronous>, transform_indices = @transform_1, window_bounds = array<i64: 256, 1>}, {pipeline_mode = #tpu.pipeline_mode<synchronous>, transform_indices = @transform_2, window_bounds = array<i64: 16, 2>}, {pipeline_mode = #tpu.pipeline_mode<synchronous>, transform_indices = @transform_3, window_bounds = array<i64: 1, 2>}, {pipeline_mode = #tpu.pipeline_mode<synchronous>, transform_indices = @transform_4, window_bounds = array<i64: 2, 16>}, {pipeline_mode = #tpu.pipeline_mode<synchronous>, transform_indices = @transform_5, window_bounds = array<i64: 1, 16>}, {transform_indices = @transform_6, window_bounds = array<i64: 1, 16, 256>}]} {
    %c0 = arith.constant 0 : index
    %c0_0 = arith.constant 0 : index
    %c0_1 = arith.constant 0 : index
    %0 = vector.load %arg1[%c0, %c0_0, %c0_1] : memref<1x16x256xf32, #tpu.memory_space<vmem>>, vector<1x16x256xf32>
    %1 = vector.shape_cast %0 : vector<1x16x256xf32> to vector<16x256xf32>
    %c0_2 = arith.constant 0 : index
    %c0_3 = arith.constant 0 : index
    %2 = vector.load %arg2[%c0_2, %c0_3] : memref<256x1xf32, #tpu.memory_space<vmem>>, vector<256x1xf32>
    %cst = arith.constant dense<0.000000e+00> : vector<16x1xf32>
    %3 = tpu.matmul %1, %2, %cst {dimension_numbers = #tpu.dot_dimension_numbers<[1], [0], [0], [1], [0, 0, 1, 1], [], []>} : vector<16x256xf32>, vector<256x1xf32>, vector<16x1xf32> -> vector<16x1xf32>
    %4 = vector.shape_cast %3 : vector<16x1xf32> to vector<1x16xf32>
    %cst_4 = arith.constant 3.906250e-03 : f32
    %5 = vector.broadcast %cst_4 : f32 to vector<1x16xf32>
    %6 = arith.mulf %4, %5 : vector<1x16xf32>
    %c0_5 = arith.constant 0 : index
    %c0_6 = arith.constant 0 : index
    %7 = vector.load %arg3[%c0_5, %c0_6] : memref<16x2xf32, #tpu.memory_space<vmem>>, vector<16x2xf32>
    %cst_7 = arith.constant dense<0.000000e+00> : vector<1x2xf32>
    %8 = tpu.matmul %6, %7, %cst_7 {dimension_numbers = #tpu.dot_dimension_numbers<[1], [0], [0], [1], [0, 0, 1, 1], [], []>} : vector<1x16xf32>, vector<16x2xf32>, vector<1x2xf32> -> vector<1x2xf32>
    %c0_8 = arith.constant 0 : index
    %c0_9 = arith.constant 0 : index
    %9 = vector.load %arg4[%c0_8, %c0_9] : memref<1x2xf32, #tpu.memory_space<vmem>>, vector<1x2xf32>
    %10 = arith.addf %8, %9 : vector<1x2xf32>
    %11 = arith.negf %10 : vector<1x2xf32>
    %12 = math.exp %11 : vector<1x2xf32>
    %cst_10 = arith.constant 1.000000e+00 : f32
    %13 = vector.broadcast %cst_10 : f32 to vector<1x2xf32>
    %14 = arith.addf %13, %12 : vector<1x2xf32>
    %15 = arith.divf %13, %14 : vector<1x2xf32>
    %16 = arith.mulf %10, %15 : vector<1x2xf32>
    %c0_11 = arith.constant 0 : index
    %c0_12 = arith.constant 0 : index
    %17 = vector.load %arg5[%c0_11, %c0_12] : memref<2x16xf32, #tpu.memory_space<vmem>>, vector<2x16xf32>
    %cst_13 = arith.constant dense<0.000000e+00> : vector<1x16xf32>
    %18 = tpu.matmul %16, %17, %cst_13 {dimension_numbers = #tpu.dot_dimension_numbers<[1], [0], [0], [1], [0, 0, 1, 1], [], []>} : vector<1x2xf32>, vector<2x16xf32>, vector<1x16xf32> -> vector<1x16xf32>
    %c0_14 = arith.constant 0 : index
    %c0_15 = arith.constant 0 : index
    %19 = vector.load %arg6[%c0_14, %c0_15] : memref<1x16xf32, #tpu.memory_space<vmem>>, vector<1x16xf32>
    %20 = arith.addf %18, %19 : vector<1x16xf32>
    %21 = arith.negf %20 : vector<1x16xf32>
    %22 = math.exp %21 : vector<1x16xf32>
    %cst_16 = arith.constant 1.000000e+00 : f32
    %23 = vector.broadcast %cst_16 : f32 to vector<1x16xf32>
    %24 = arith.addf %23, %22 : vector<1x16xf32>
    %25 = arith.divf %23, %24 : vector<1x16xf32>
    %26 = vector.shape_cast %25 : vector<1x16xf32> to vector<1x16x1xf32>
    %27 = vector.broadcast %26 : vector<1x16x1xf32> to vector<1x16x256xf32>
    %28 = arith.mulf %0, %27 : vector<1x16x256xf32>
    %c0_17 = arith.constant 0 : index
    %c0_18 = arith.constant 0 : index
    %c0_19 = arith.constant 0 : index
    %29 = vector.load %arg7[%c0_17, %c0_18, %c0_19] : memref<1x16x256xf32, #tpu.memory_space<vmem>>, vector<1x16x256xf32>
    tpu.vector_store %arg7[%c0_17, %c0_18, %c0_19], %28 {strides = array<i32>} : memref<1x16x256xf32, #tpu.memory_space<vmem>>, vector<1x16x256xf32>,
    return
  }
  func.func @transform_0(%arg0: i32) -> (i32, i32, i32) {
    %c0_i32 = arith.constant 0 : i32
    %c0_i32_0 = arith.constant 0 : i32
    %c0_i32_1 = arith.constant 0 : i32
    return %arg0, %c0_i32, %c0_i32_0 : i32, i32, i32
  }
  func.func @transform_1(%arg0: i32) -> (i32, i32) {
    %c0_i32 = arith.constant 0 : i32
    %c0_i32_0 = arith.constant 0 : i32
    %c0_i32_1 = arith.constant 0 : i32
    return %c0_i32, %c0_i32_0 : i32, i32
  }
  func.func @transform_2(%arg0: i32) -> (i32, i32) {
    %c0_i32 = arith.constant 0 : i32
    %c0_i32_0 = arith.constant 0 : i32
    %c0_i32_1 = arith.constant 0 : i32
    return %c0_i32, %c0_i32_0 : i32, i32
  }
  func.func @transform_3(%arg0: i32) -> (i32, i32) {
    %c0_i32 = arith.constant 0 : i32
    %c0_i32_0 = arith.constant 0 : i32
    %c0_i32_1 = arith.constant 0 : i32
    return %c0_i32, %c0_i32_0 : i32, i32
  }
  func.func @transform_4(%arg0: i32) -> (i32, i32) {
    %c0_i32 = arith.constant 0 : i32
    %c0_i32_0 = arith.constant 0 : i32
    %c0_i32_1 = arith.constant 0 : i32
    return %c0_i32, %c0_i32_0 : i32, i32
  }
  func.func @transform_5(%arg0: i32) -> (i32, i32) {
    %c0_i32 = arith.constant 0 : i32
    %c0_i32_0 = arith.constant 0 : i32
    %c0_i32_1 = arith.constant 0 : i32
    return %c0_i32, %c0_i32_0 : i32, i32
  }
  func.func @transform_6(%arg0: i32) -> (i32, i32, i32) {
    %c0_i32 = arith.constant 0 : i32
    %c0_i32_0 = arith.constant 0 : i32
    %c0_i32_1 = arith.constant 0 : i32
    return %arg0, %c0_i32, %c0_i32_0 : i32, i32, i32
  }
}

</mosaic_0001>

<bundles_post_ra>
// kernel: tpu_custom_call.1
= control target key start
LH: loop header
LB: loop body
LE: loop exit
PB: predicated region body
PF: predicated region fallthrough
CT: control target
= control target key end

     0   :  { %11 = vsyncpa [#allocation3], 0  ;;  %s1115_s0 = inlined_call_operand.vmem [shape: f32[2,16,256], index: 0, kind: input, shape index: {}]   ;;  %s1116_s1 = inlined_call_operand.vmem [shape: f32[256,1], index: 1, kind: input, shape index: {}]   ;;  %s1117_s2 = inlined_call_operand.vmem [shape: f32[16,2], index: 2, kind: input, shape index: {}]   ;;  %s1118_s3 = inlined_call_operand.vmem [shape: f32[1,2], index: 3, kind: input, shape index: {}]   ;;  %s1119_s4 = inlined_call_operand.vmem [shape: f32[2,16], index: 4, kind: input, shape index: {}]   ;;  %s1120_s5 = inlined_call_operand.vmem [shape: f32[1,16], index: 5, kind: input, shape index: {}]   ;;  %s1121_s6 = inlined_call_operand.hbm [shape: f32[2,16,256], index: 6, kind: output, shape index: {}]  }
   0x1   :  { %13 = vsyncpa [#allocation3 + $0x1], 0  ;;  %s878_s21 = smov 0   ;;  %s880_s22 = smov 0  }
   0x2   :  { %s882_s23 = smov 0   ;;  %s884_s24 = smov 0  }
   0x3 LB: > { %s899_s25 = sadd.s32 4294967295, %s835_s24   ;;  %s648_s26 = sadd.s32 4294967294, %s835_s24   ;;  %s835_s24 = sphi %s884_s24, %s1127_s24   ;;  %s831_s23 = sphi %s882_s23, %s1126_s23   ;;  %s827_s22 = sphi %s880_s22, %s1125_s22   ;;  %s823_s21 = sphi %s878_s21, %s1124_s21  }
   0x4   : > { %s903_s27 = sadd.s32 1, %s835_s24   ;;  %s157_s28 = sadd.s32 1, %s831_s23 }
   0x5   : > { %s154_s29 = ssub.s32 %s835_s24, %s903_s27  ;;  %p167_p0 = scmp.ne.s32.totalorder %s831_s23, %s827_s22 }
   0x6   : > { %p155_p1 = scmp.eq.s32.totalorder %s154_s29, 0  ;;  %p168_p2 = scmp.eq.s32.totalorder %s899_s25, 1 }
   0x7   : > { %p173_p3 = scmp.ne.s32.totalorder %s827_s22, %s823_s21  ;;  %p174_p4 = scmp.eq.s32.totalorder %s648_s26, 1 }
   0x8   : > { %s914_s30 = scalar_select %p155_p1, %s831_s23, %s157_s28  }
   0x9   : > { %p916_p5 = por %p168_p2, %p167_p0  ;;  %p920_p6 = por %p174_p4, %p173_p3 }
   0xa   : > { %p651_p7 = scmp.ge.s32.totalorder %s835_s24, 1  ;;  %p215_p8 = scmp.lt.s32.totalorder %s835_s24, 3 }
   0xc   : > { %p216_p9 = pnand %p651_p7, %p215_p8 }
   0xd   : > { %p245_p10 = scmp.lt.s32.totalorder (!%p216_p9), %s899_s25, 1  ;;  %s242_s15 = sand.u32 (!%p216_p9), 1, %s827_s22  }
   0xe   : > { %219 = sbr.rel (%p216_p9) target bundleno = 975 (0x3cf), region = 44  ;;  %s652_s16 = sshll.u32 (!%p216_p9), %s242_s15, 5 }
   0xf   : > { %s244_s17 = scalar_lea.vmem (!%p216_p9), [#allocation2], %s652_s16  ;;  %s666_s20 = sshll.u32 (!%p216_p9), %s899_s25, 9 }
  0x10   : > { %s840_s10 = smov (!%p216_p9), [#allocation2]  }
  0x13   : > { %v285_v0 = vld [vmem:[%s1116_s1 + $0xf8] sm:$0xff]  ;;  %v284_v2 = vld [vmem:[%s1116_s1 + $0xf0] sm:$0xff]  ;;  %v283_v4 = vld [vmem:[%s1116_s1 + $0xe8] sm:$0xff]  ;;  %s246_s19 = scalar_select %p245_p10, %s899_s25, 1  ;;  %v837_v36 = vmov 0   ;;  %v838_v41 = vmov 0.0   ;;  %v374_v48 = vlaneseq }
  0x14   : > { %v269_v1 = vld [vmem:[%s1116_s1 + $0x78] sm:$0xff]  ;;  %667 = vmatprep.subr.mxu0 %v285_v0  ;;  %v268_v3 = vld [vmem:[%s1116_s1 + $0x70] sm:$0xff]  ;;  %v267_v5 = vld [vmem:[%s1116_s1 + $0x68] sm:$0xff]  ;;  %766 = vset.pattern.permute.xlu0 %v837_v36  ;;  %vm839_vm0 = vmmov 0   ;;  %vm385_vm1 = vcmask 130112   ;;  %vm387_vm2 = vcmask 130048  }
  0x15   : > { %668 = vmatpush3.msra.mxu0 %v269_v1  ;;  %v282_v6 = vld [vmem:[%s1116_s1 + $0xe0] sm:$0xff]  ;;  %s665_s9 = sshll.u32 %s246_s19, 5  ;;  %v281_v8 = vld [vmem:[%s1116_s1 + $0xd8] sm:$0xff]  ;;  %v280_v10 = vld [vmem:[%s1116_s1 + $0xd0] sm:$0xff]  ;;  %710 = vmatprep.subr.mxu1 %v838_v41  ;;  %v375_v49 = vand.u32 127, %v374_v48  ;;  %v377_v50 = vshrl.u32 %v374_v48, 7 }
  0x16   : > { %669 = vmatprep.subr.mxu0 %v284_v2  ;;  %v266_v7 = vld [vmem:[%s1116_s1 + $0x60] sm:$0xff]  ;;  %v265_v9 = vld [vmem:[%s1116_s1 + $0x58] sm:$0xff]  ;;  %s961_s18 = scalar_lea.vmem %s1115_s0, %s665_s9  ;;  %v264_v11 = vld [vmem:[%s1116_s1 + $0x50] sm:$0xff]  ;;  %714 = vmatprep.mubr.msk.f32.mxu1 %vm839_vm0, %v838_v41  ;;  %vm473_vm3 = vcmask 1041408   ;;  %vm469_vm4 = vcmask 15360   ;;  %s586_s19 = sshll.u32 %s244_s17, 4  ;;  %s1066_s19 = int_to_ptr.vmem [resolvable:$true] %s586_s19 }
  0x17   : > { %670 = vmatpush3.msra.mxu0 %v268_v3  ;;  %v279_v12 = vld [vmem:[%s1116_s1 + $0xc8] sm:$0xff]  ;;  %v278_v15 = vld [vmem:[%s1116_s1 + $0xc0] sm:$0xff]  ;;  %v277_v17 = vld [vmem:[%s1116_s1 + $0xb8] sm:$0xff]  ;;  %v380_v51 = vadd.s32 4294967288, %v375_v49  ;;  %v378_v53 = vsub.s32 %v375_v49, %v377_v50  ;;  %s1075_s25 = scalar_lea.sflag [#allocation3], %s242_s15  ;;  %s775_s29 = scalar_lea.vmem %s1066_s19, 512 }
  0x18   : > { %671 = vmatprep.subr.mxu0 %v283_v4  ;;  %v973_v13 = vld [vmem:[%s961_s18 + $0x8] sm:$0xff]  ;;  %v262_v16 = vld [vmem:[%s1116_s1 + $0x40] sm:$0xff]  ;;  %v261_v18 = vld [vmem:[%s1116_s1 + $0x38] sm:$0xff]  ;;  %p776_p11 = scmp.ne.s32.totalorder %s1066_s19, %s775_s29  ;;  %s779_s9 = sshll.u32 %s840_s10, 4  ;;  %s780_s9 = int_to_ptr.vmem [resolvable:$false] %s779_s9 }
  0x19   : > { %672 = vmatpush3.msra.mxu0 %v267_v5  ;;  %v263_v14 = vld [vmem:[%s1116_s1 + $0x48] sm:$0xff]  ;;  %350 = vmatprep.mubr.f32.mxu0 %v973_v13  ;;  %v276_v19 = vld [vmem:[%s1116_s1 + $0xb0] sm:$0xff]  ;;  %v274_v23 = vld [vmem:[%s1116_s1 + $0xa0] sm:$0xff]  ;;  %v383_v54 = vsub.s32 %v380_v51, %v377_v50  ;;  %s781_s11 = scalar_lea.vmem %s780_s9, 1024  ;;  %p782_p0 = scmp.lt.s32.totalorder %s1066_s19, %s780_s9 }
  0x1a   : > { %673 = vmatprep.subr.mxu0 %v282_v6  ;;  %v260_v20 = vld [vmem:[%s1116_s1 + $0x30] sm:$0xff]  ;;  %v275_v21 = vld [vmem:[%s1116_s1 + $0xa8] sm:$0xff]  ;;  %v258_v24 = vld [vmem:[%s1116_s1 + $0x20] sm:$0xff]  ;;  %p777_p12 = pnand %p776_p11, %p916_p5  ;;  %p783_p1 = scmp.lt.s32.totalorder %s781_s11, %s775_s29 }
  0x1b   : > { %674 = vmatpush3.msra.mxu0 %v266_v7  ;;  %v259_v22 = vld [vmem:[%s1116_s1 + $0x28] sm:$0xff]  ;;  %v273_v25 = vld [vmem:[%s1116_s1 + $0x98] sm:$0xff]  ;;  %v272_v27 = vld [vmem:[%s1116_s1 + $0x90] sm:$0xff] }
  0x1c   : > { %675 = vmatprep.subr.mxu0 %v281_v8  ;;  %v257_v26 = vld [vmem:[%s1116_s1 + $0x18] sm:$0xff]  ;;  %v256_v28 = vld [vmem:[%s1116_s1 + $0x10] sm:$0xff]  ;;  %v271_v29 = vld [vmem:[%s1116_s1 + $0x88] sm:$0xff]  ;;  %p778_p13 = pneg %p777_p12  ;;  %p784_p2 = por %p783_p1, %p782_p0 }
  0x1d   : > { %676 = vmatpush3.msra.mxu0 %v265_v9  ;;  %v255_v30 = vld [vmem:[%s1116_s1 + $0x8] sm:$0xff]  ;;  %v270_v31 = vld [vmem:[%s1116_s1 + $0x80] sm:$0xff]  ;;  %v1037_v34 = vld [vmem:[%s961_s18 + $0x18] sm:$0xff] }
  0x1e   : > { %677 = vmatprep.subr.mxu0 %v280_v10  ;;  %v254_v32 = vld [vmem:[%s1116_s1] sm:$0xff]  ;;  %v1042_v35 = vld [vmem:[%s961_s18 + $0x10] sm:$0xff]  ;;  %v364_v44 = vld [vmem:[%s1117_s2 + $0x8] sm:$0xff]  ;;  %p785_p3 = pnand %p784_p2, %p778_p13 }
  0x1f   : > { %678 = vmatpush3.msra.mxu0 %v264_v11  ;;  %v1034_v33 = vld [vmem:[%s961_s18] sm:$0xff]  ;;  %711 = vmatpush3.msra.mxu1 %v364_v44  ;;  %s1071_s18 = scalar_lea.hbm %s1121_s6, %s666_s20 }
  0x20   : > { %679 = vmatprep.subr.mxu0 %v279_v12  ;;  %v363_v46 = vld [vmem:[%s1117_s2] sm:$0xff]  ;;  %712 = vmatprep.subr.mxu1 %v838_v41  ;;  %v555_v12 = vsub.s32 0, %v377_v50 }
  0x21   : > { %680 = vmatpush3.msra.mxu0 %v263_v14  ;;  %713 = vmatpush3.msra.mxu1 %v363_v46  ;;  %v467_v59 = vld [vmem:[%s1119_s4] sm:$0x3] }
  0x22   : > { %681 = vmatprep.subr.mxu0 %v278_v15  ;;  %717 = vmatprep.subr.mxu1 %v838_v41  ;;  %v365_v60 = vld [vmem:[%s1118_s3] sm:$0x1] }
  0x23   : > { %682 = vmatpush3.msra.mxu0 %v262_v16  ;;  %v468_v5 = vld [vmem:[%s1120_s5] sm:$0x1] }
  0x24   : > { %683 = vmatprep.subr.mxu0 %v277_v17 }
  0x25   : > { %684 = vmatpush3.msra.mxu0 %v261_v18 }
  0x26   : > { %685 = vmatprep.subr.mxu0 %v276_v19 }
  0x27   : > { %686 = vmatpush3.msra.mxu0 %v260_v20 }
  0x28   : > { %687 = vmatprep.subr.mxu0 %v275_v21 }
  0x29   : > { %688 = vmatpush3.msra.mxu0 %v259_v22 }
  0x2a   : > { %689 = vmatprep.subr.mxu0 %v274_v23 }
  0x2b   : > { %690 = vmatpush3.msra.mxu0 %v258_v24 }
  0x2c   : > { %691 = vmatprep.subr.mxu0 %v273_v25 }
  0x2d   : > { %692 = vmatpush3.msra.mxu0 %v257_v26 }
  0x2e   : > { %693 = vmatprep.subr.mxu0 %v272_v27 }
  0x2f   : > { %694 = vmatpush3.msra.mxu0 %v256_v28 }
  0x30   : > { %695 = vmatprep.subr.mxu0 %v271_v29 }
  0x31   : > { %696 = vmatpush3.msra.mxu0 %v255_v30 }
  0x32   : > { %697 = vmatprep.subr.mxu0 %v270_v31 }
  0x33   : > { %698 = vmatpush3.msra.mxu0 %v254_v32 }
  0x34   : > { %351 = vmatmul.mubr.f32.vlgmr.msra.gmra.mxu0 %v1034_v33 }
  0x35   : > { %355 = vmatprep.mubr.f32.mxu0 %v1037_v34 }
  0x38   : > { %356 = vmatmul.mubr.f32.gmra.mxu0 %v1042_v35 }
  0xf4   : > { %v699_v37 = vpop.f32.mrf.mxu0 }
  0xf6   : > { %v700_v38 = vpop.f32.mrf.mxu0 }
  0xf7   : > { %v701_v39 = vadd.f32 %v700_v38, %v699_v37 }
  0xf8   : > { %v702_v40 = vpop.f32.mrf.mxu0 }
  0xf9   : > { %v361_v42 = vmul.f32 0.00390625, %v701_v39 }
  0xfa   : > { %v703_v43 = vpop.f32.mrf.mxu0 }
  0xfb   : > { %v704_v45 = vadd.f32 %v703_v43, %v702_v40  ;;  %369 = vperm.xlu0 %766, %v361_v42  }
  0xfd   : > { %v362_v47 = vmul.f32 0.00390625, %v704_v45 }
  0xff   : > { %372 = vperm.xlu0 %766, %v362_v47  }
 0x176   : > { %v370_v52 = vpop.permute.xlu0 %369 }
 0x177   : > { %v379_v56 = vrot.slane %v370_v52, %v378_v53 }
 0x17a   : > { %v373_v55 = vpop.permute.xlu0 %372 }
 0x17b   : > { %v384_v57 = vrot.slane %v373_v55, %v383_v54 }
 0x17d   : > { %v386_v58 = vsel %vm385_vm1, %v384_v57, %v379_v56 }
 0x17e   : > { %715 = vmatmul.mubr.msk.f32.vlgmr.msra.gmra.mxu1 %vm387_vm2, %v386_v58 }
 0x17f   : > { %719 = vmatprep.mubr.msk.f32.mxu1 %vm839_vm0, %v838_v41  ;;  %718 = vmatpush3.msk.msra.mxu1 %vm473_vm3, %v467_v59 }
 0x23e   : > { %v456_v61 = vpop.f32.mrf.mxu1 }
 0x23f   : > { %v457_v62 = vadd.f32 %v456_v61, %v365_v60 }
 0x240   : > { %v716_v63 = vpop.f32.mrf.mxu1 }
 0x241   : > { %v656_v0 = vmul.f32 -1.442695, %v457_v62 }
 0x243   : > { %767 = vpow2.f32 %v656_v0 }
 0x250   : > { %v768_v1 = vpop.eup %767 }
 0x251   : > { %v463_v2 = vadd.f32 1.0, %v768_v1 }
 0x253   : > { %769 = vrcp.f32 %v463_v2 }
 0x260   : > { %v770_v3 = vpop.eup %769 }
 0x261   : > { %v466_v4 = vmul.f32 %v770_v3, %v457_v62 }
 0x263   : > { %720 = vmatmul.mubr.msk.f32.vlgmr.msra.gmra.mxu1 %vm469_vm4, %v466_v4 }
 0x323   : > { %v543_v6 = vpop.f32.mrf.mxu1 }
 0x324   : > { %v544_v7 = vadd.f32 %v543_v6, %v468_v5 }
 0x325   : > { %v721_v8 = vpop.f32.mrf.mxu1 }
 0x326   : > { %v659_v9 = vmul.f32 -1.442695, %v544_v7 }
 0x328   : > { %771 = vpow2.f32 %v659_v9 }
 0x335   : > { %v772_v10 = vpop.eup %771 }
 0x336   : > { %v550_v11 = vadd.f32 1.0, %v772_v10 }
 0x338   : > { %773 = vrcp.f32 %v550_v11 }
 0x345   : > { %v774_v14 = vpop.eup %773 }
 0x346   : > { %v556_v15 = vrot.slane %v774_v14, %v555_v12 }
 0x348   : > { %558 = vbcast.lane.b32.xlu1 %v556_v15, 256 }
 0x34c   : > { %562 = vbcast.lane.b32.xlu1 %v556_v15, 264 }
 0x3ba   : > { %v559_v16 = vpop.permute.xlu1 %558 }
 0x3bb   : > { %v564_v17 = vmul.f32 %v559_v16, %v1034_v33  ;;  %v565_v18 = vmul.f32 %v559_v16, %v973_v13 }
 0x3bd   : > { %568 = vst [vmem:[%s244_s17] sm:$0xff] %v564_v17  ;;  %569 = vst [vmem:[%s244_s17 + $0x8] sm:$0xff] %v565_v18 }
 0x3be   : > { %v563_v19 = vpop.permute.xlu1 %562 }
 0x3bf   : > { %v566_v20 = vmul.f32 %v563_v19, %v1042_v35  ;;  %v567_v13 = vmul.f32 %v563_v19, %v1037_v34 }
 0x3c1   : > { %570 = vst [vmem:[%s244_s17 + $0x10] sm:$0xff] %v566_v20  ;;  %571 = vst [vmem:[%s244_s17 + $0x18] sm:$0xff] %v567_v13 }
 0x3c2   : > { %788 = shalt.err (!%p785_p3)
}
 0x3c3   : > { %s789_s12 = scalar_lea.hbm %s1071_s18, 512  ;;  %s793_s15 = scalar_lea.hbm %s1121_s6, 1024 }
 0x3c4   : > { %p790_p4 = scmp.ne.s32.totalorder %s1071_s18, %s789_s12  ;;  %p794_p9 = scmp.lt.s32.totalorder %s1071_s18, %s1121_s6 }
 0x3c5   : > { %p795_p10 = scmp.lt.s32.totalorder %s793_s15, %s789_s12 }
 0x3c6   : > { %p791_p7 = pnand %p790_p4, %p916_p5 }
 0x3c7   : > { %p796_p11 = por %p795_p10, %p794_p9 }
 0x3c8   : > { %p792_p8 = pneg %p791_p7 }
 0x3ca   : > { %p797_p12 = pnand %p796_p11, %p792_p8 }
 0x3cc   : > { %800 = shalt.err (!%p797_p12)
}
 0x3cd   : > { %s841_s20 = smov 256   ;;  %s842_s26 = smov 16  }
 0x3ce   : > { %722 = dma.vmem_to_hbm [thread:$0]  (%p916_p5), %s1066_s19, 512, %s1071_s18, %s1075_s25, %s841_s20, %s841_s20, %s842_s26  }
 0x3cf PF: > { %p728_p13 = scmp.ge.s32.totalorder %s835_s24, 2  ;;  %s601_s28 = sand.u32 1, %s823_s21  }
 0x3d0   : > { %s602_s29 = scalar_lea.sflag [#allocation3], %s601_s28 }
 0x3d1   : > { %p725_p0 = pnand %p728_p13, %p920_p6 }
 0x3d3   : > { %p726_p1 = pneg %p725_p0 }
 0x3d5   : > { %818 = dma.done.wait (%p726_p1), %s602_s29, 512  }
 0x3d6   : > { %820 = vsyncadd (%p726_p1), %s602_s29, 4294966784  ;;  %p16_p2 = scmp.ge.s32.totalorder %s903_s27, 4   ;;  %s1124_s21 = smov %s827_s22 }
 0x3d7   : > { %s1125_s22 = smov %s831_s23  ;;  %s1126_s23 = smov %s914_s30 }
 0x3d8   : > { %s1127_s24 = smov %s903_s27  ;;  %18 = sbr.rel (!%p16_p2) target bundleno = 3 (0x3), region = 79 }
 0x3dd   :  { %607 = vsyncpa [#allocation3], 1 }
 0x3de   :  { %609 = vsyncpa [#allocation3 + $0x1], 1 }

</bundles_post_ra>
